<compile_context>
chip_gen: v7x
topology: tpu7x:2x2x1
jax: 0.10.0
libtpu: 0.0.40
codegen_flags: <defaults>
</compile_context>

<pallas_src>
import functools

import jax
import jax.numpy as jnp
from jax.experimental import pallas as pl
from jax.experimental.pallas import tpu as pltpu

NUM_CLASSES = 10  # hardcoded in the reference (K.one_hot(..., num_classes=10))


def _dice_kernel(pred_ref, true_ref, isum_ref, dsum_ref,
                 acc_i_ref, acc_d_ref, acc_f_ref,
                 *, hw, tile_hw, tiles_per_chunk, needs_mask):
    ck = pl.program_id(1)          # parallel pixel-chunk axis (megacore)
    j = pl.program_id(2)           # reduction axis over pixel tiles in a chunk
    last_ck = pl.num_programs(1) - 1
    last_j = pl.num_programs(2) - 1

    @pl.when(j == 0)
    def _():
        acc_i_ref[...] = jnp.zeros_like(acc_i_ref)
        acc_d_ref[...] = jnp.zeros_like(acc_d_ref)
        acc_f_ref[...] = jnp.zeros_like(acc_f_ref)

    def accumulate(masked):
        t = true_ref[0].astype(jnp.float32)   # (C, L)  lane-dense over pixels
        p = pred_ref[0].astype(jnp.float32)   # (C, L)
        c_dim, l_dim = t.shape

        # argmax over the channel (sublane) axis, first-occurrence tie-break.
        cls = jax.lax.broadcasted_iota(jnp.int32, (c_dim, l_dim), 0)  # (C, L)
        m = jnp.max(t, axis=0, keepdims=True)                         # (1, L)
        idx = jnp.min(jnp.where(t == m, cls, c_dim),
                      axis=0, keepdims=True)                          # (1, L)

        fg = idx >= 1                                  # (1, L) foreground pixel
        keep_fg = jnp.logical_and(cls == idx, fg)      # (C, L) fg one-hot mask

        if masked:
            # ragged last tile: zero pixels past the real H*W extent once.
            lane = jax.lax.broadcasted_iota(jnp.int32, (1, l_dim), 1)
            base = (ck * tiles_per_chunk + j) * tile_hw
            pix_ok = (base + lane) < hw                # (1, L)
            p = jnp.where(pix_ok, p, 0.0)              # broadcasts over C
            fg = jnp.logical_and(fg, pix_ok)

        # intersect: p at the argmax class (foreground only).  p is already
        # masked on the ragged tile, so keep_fg needs no pixel mask.
        acc_i_ref[...] += jnp.where(keep_fg, p, 0.0)
        # denom part 1: raw p over ALL classes (class 0 removed in epilogue).
        acc_d_ref[...] += p
        # denom part 2: foreground one-hot count as a 1-sublane indicator.
        acc_f_ref[...] += fg.astype(jnp.float32)

    if needs_mask:
        is_last_tile = jnp.logical_and(ck == last_ck, j == last_j)

        @pl.when(is_last_tile)
        def _():
            accumulate(True)

        @pl.when(jnp.logical_not(is_last_tile))
        def _():
            accumulate(False)
    else:
        accumulate(False)

    @pl.when(j == last_j)
    def _():
        a_d = acc_d_ref[...]
        isum = jnp.sum(acc_i_ref[...])
        dsum = (jnp.sum(a_d) - jnp.sum(a_d[0:1, :])   # drop class 0 once here
                + jnp.sum(acc_f_ref[...]))
        isum_ref[...] = isum.reshape(1, 1, 1)
        dsum_ref[...] = dsum.reshape(1, 1, 1)


def _pick_tiles(hw, max_tile):
    """Return (tile_hw, total_tiles, needs_mask)."""
    if hw <= max_tile:
        return hw, 1, False                    # full-dim block is allowed
    tile = max(128, max_tile - (max_tile % 128))
    # Prefer a lane-aligned tile that divides hw (skips tail masking entirely),
    # but don't shrink below half the requested tile for it.
    if hw % 128 == 0:
        cand = tile
        floor = max(128, tile // 2)
        while cand >= floor and hw % cand != 0:
            cand -= 128
        if cand >= floor and hw % cand == 0:
            tile = cand
    total = -(-hw // tile)
    return tile, total, (hw % tile) != 0


def _pick_chunks(n, total_tiles):
    """Split pixel tiles across a second parallel axis when batch is tiny."""
    if n >= 2 or total_tiles < 2:
        return 1
    for cand in (2, 3, 4, 5):
        if total_tiles % cand == 0:
            return cand
    return 1


def dice_coef_cat_loss(y_pred, y_true, smooth=1e-07, max_tile=32768):
    """y_pred, y_true: [N, C, H, W] float arrays (NCHW, like the PyTorch module)."""
    n, c, h, w = y_pred.shape
    assert y_true.shape == y_pred.shape
    assert c == NUM_CLASSES, "reference hardcodes num_classes=10"
    hw = h * w

    # Free reshapes (contiguous memory): no transpose / pad copies in HBM.
    pred3 = y_pred.reshape(n, c, hw)
    true3 = y_true.reshape(n, c, hw)

    tile_hw, total_tiles, needs_mask = _pick_tiles(hw, max_tile)
    n_chunks = _pick_chunks(n, total_tiles)
    tiles_per_chunk = total_tiles // n_chunks

    kernel = functools.partial(_dice_kernel, hw=hw, tile_hw=tile_hw,
                               tiles_per_chunk=tiles_per_chunk,
                               needs_mask=needs_mask)

    i_part, d_part = pl.pallas_call(
        kernel,
        out_shape=(jax.ShapeDtypeStruct((n, n_chunks, 1), jnp.float32),
                   jax.ShapeDtypeStruct((n, n_chunks, 1), jnp.float32)),
        grid_spec=pltpu.PrefetchScalarGridSpec(
            num_scalar_prefetch=0,
            grid=(n, n_chunks, tiles_per_chunk),
            in_specs=[
                pl.BlockSpec((1, c, tile_hw),
                             lambda i, ck, j: (i, 0, ck * tiles_per_chunk + j)),
                pl.BlockSpec((1, c, tile_hw),
                             lambda i, ck, j: (i, 0, ck * tiles_per_chunk + j)),
            ],
            out_specs=[
                pl.BlockSpec((1, 1, 1), lambda i, ck, j: (i, ck, 0)),
                pl.BlockSpec((1, 1, 1), lambda i, ck, j: (i, ck, 0)),
            ],
            scratch_shapes=[
                pltpu.VMEM((c, tile_hw), jnp.float32),   # intersect acc
                pltpu.VMEM((c, tile_hw), jnp.float32),   # raw-p acc
                pltpu.VMEM((1, tile_hw), jnp.float32),   # fg one-hot count acc
            ],
        ),
        compiler_params=pltpu.CompilerParams(
            dimension_semantics=("parallel", "parallel", "arbitrary"),
            vmem_limit_bytes=32 << 20),
    )(pred3, true3)

    # Tiny scalar epilogue in JAX (combines per-(batch, chunk) partial sums).
    total_i = jnp.sum(i_part)
    total_d = jnp.sum(d_part)
    return 1.0 - 2.0 * total_i / (total_d + smooth)


def _reference(y_pred, y_true, smooth=1e-07):
    """Pure-JAX reference of the intended semantics (for a sanity check)."""
    p = jnp.transpose(y_pred, (0, 2, 3, 1))
    labels = jnp.argmax(y_true, axis=1)
    onehot = jax.nn.one_hot(labels, NUM_CLASSES, dtype=jnp.float32)
    t_f = onehot[..., 1:].reshape(-1)
    p_f = p[..., 1:].reshape(-1)
    intersect = jnp.sum(t_f * p_f)
    denom = jnp.sum(t_f + p_f)
    return 1.0 - 2.0 * intersect / (denom + smooth)


def _make_inputs(key, n, h, w):
    k1, k2 = jax.random.split(key)
    logits = jax.random.normal(k1, (n, NUM_CLASSES, h, w), dtype=jnp.float32)
    y_pred = jax.nn.softmax(logits, axis=1)
    labels = jax.random.randint(k2, (n, h, w), 0, NUM_CLASSES)
    y_true = jnp.transpose(jax.nn.one_hot(labels, NUM_CLASSES, dtype=jnp.float32),
                           (0, 3, 1, 2))
    return y_pred, y_true


if __name__ == "__main__":
    key = jax.random.PRNGKey(0)
    ka, kb, kc = jax.random.split(key, 3)

    # Case 1: small canonical shapes, single pixel tile per batch element.
    y_pred, y_true = _make_inputs(ka, 2, 16, 16)
    loss = jax.block_until_ready(dice_coef_cat_loss(y_pred, y_true))
    ref = _reference(y_pred, y_true)
    assert jnp.allclose(loss, ref, atol=1e-5, rtol=1e-5), (loss, ref)

    # Case 2: multi-tile accumulation + ragged-tail masking
    # (H*W = 288 with 128-pixel tiles -> 3 tiles, last one partial; N=2 so no chunking).
    y_pred2, y_true2 = _make_inputs(kb, 2, 16, 18)
    loss2 = jax.block_until_ready(
        dice_coef_cat_loss(y_pred2, y_true2, max_tile=128))
    ref2 = _reference(y_pred2, y_true2)
    assert jnp.allclose(loss2, ref2, atol=1e-5, rtol=1e-5), (loss2, ref2)

    # Case 3: N=1 -> pixel tiles split across a parallel chunk axis (megacore),
    # combined with a ragged last tile (3 chunks x 1 tile, last chunk partial).
    y_pred3, y_true3 = _make_inputs(kc, 1, 16, 18)
    loss3 = jax.block_until_ready(
        dice_coef_cat_loss(y_pred3, y_true3, max_tile=128))
    ref3 = _reference(y_pred3, y_true3)
    assert jnp.allclose(loss3, ref3, atol=1e-5, rtol=1e-5), (loss3, ref3)

    print("KERNEL_OK")
</pallas_src>

<mosaic_0001>
module attributes {stable_mosaic.version = 11 : i64} {
  func.func @_dice_kernel(%arg0: i32, %arg1: i32, %arg2: i32, %arg3: memref<1x10x256xf32, #tpu.memory_space<vmem>>, %arg4: memref<1x10x256xf32, #tpu.memory_space<vmem>>, %arg5: memref<1x1x1xf32, #tpu.memory_space<vmem>>, %arg6: memref<1x1x1xf32, #tpu.memory_space<vmem>>, %arg7: memref<10x256xf32, #tpu.memory_space<vmem>>, %arg8: memref<10x256xf32, #tpu.memory_space<vmem>>, %arg9: memref<1x256xf32, #tpu.memory_space<vmem>>) attributes {dimension_semantics = [#tpu.dimension_semantics<parallel>, #tpu.dimension_semantics<parallel>, #tpu.dimension_semantics<arbitrary>], iteration_bounds = array<i64: 2, 1, 1>, scalar_prefetch = 0 : i64, scratch_operands = 3 : i64, tpu.core_type = #tpu.core_type<tc>, window_params = [{transform_indices = @transform_0, window_bounds = array<i64: 1, 10, 256>}, {transform_indices = @transform_1, window_bounds = array<i64: 1, 10, 256>}, {transform_indices = @transform_2, window_bounds = array<i64: 1, 1, 1>}, {transform_indices = @transform_3, window_bounds = array<i64: 1, 1, 1>}]} {
    %c0_i32 = arith.constant 0 : i32
    %0 = arith.cmpi eq, %arg2, %c0_i32 : i32
    %1 = arith.extui %0 : i1 to i32
    %c0_i32_0 = arith.constant 0 : i32
    %2 = arith.cmpi ne, %1, %c0_i32_0 : i32
    scf.if %2 {
      %cst_22 = arith.constant 0.000000e+00 : f32
      %38 = vector.broadcast %cst_22 : f32 to vector<10x256xf32>
      %c0_23 = arith.constant 0 : index
      %c0_24 = arith.constant 0 : index
      %39 = vector.load %arg7[%c0_23, %c0_24] : memref<10x256xf32, #tpu.memory_space<vmem>>, vector<10x256xf32>
      tpu.vector_store %arg7[%c0_23, %c0_24], %38 {strides = array<i32>} : memref<10x256xf32, #tpu.memory_space<vmem>>, vector<10x256xf32>,
      %cst_25 = arith.constant 0.000000e+00 : f32
      %40 = vector.broadcast %cst_25 : f32 to vector<10x256xf32>
      %c0_26 = arith.constant 0 : index
      %c0_27 = arith.constant 0 : index
      %41 = vector.load %arg8[%c0_26, %c0_27] : memref<10x256xf32, #tpu.memory_space<vmem>>, vector<10x256xf32>
      tpu.vector_store %arg8[%c0_26, %c0_27], %40 {strides = array<i32>} : memref<10x256xf32, #tpu.memory_space<vmem>>, vector<10x256xf32>,
      %cst_28 = arith.constant 0.000000e+00 : f32
      %42 = vector.broadcast %cst_28 : f32 to vector<1x256xf32>
      %c0_29 = arith.constant 0 : index
      %c0_30 = arith.constant 0 : index
      %43 = vector.load %arg9[%c0_29, %c0_30] : memref<1x256xf32, #tpu.memory_space<vmem>>, vector<1x256xf32>
      tpu.vector_store %arg9[%c0_29, %c0_30], %42 {strides = array<i32>} : memref<1x256xf32, #tpu.memory_space<vmem>>, vector<1x256xf32>,
    } else {
    }
    %c0 = arith.constant 0 : index
    %c0_1 = arith.constant 0 : index
    %c0_2 = arith.constant 0 : index
    %3 = vector.load %arg4[%c0, %c0_1, %c0_2] : memref<1x10x256xf32, #tpu.memory_space<vmem>>, vector<1x10x256xf32>
    %4 = vector.shape_cast %3 : vector<1x10x256xf32> to vector<10x256xf32>
    %c0_3 = arith.constant 0 : index
    %c0_4 = arith.constant 0 : index
    %c0_5 = arith.constant 0 : index
    %5 = vector.load %arg3[%c0_3, %c0_4, %c0_5] : memref<1x10x256xf32, #tpu.memory_space<vmem>>, vector<1x10x256xf32>
    %6 = vector.shape_cast %5 : vector<1x10x256xf32> to vector<10x256xf32>
    %7 = tpu.iota {dimensions = array<i32: 0>} : vector<10x256xi32>
    %cst = arith.constant dense<0xFF800000> : vector<256xf32>
    %8 = vector.multi_reduction <maximumf>, %4, %cst [0] : vector<10x256xf32> to vector<256xf32>
    %9 = vector.shape_cast %8 : vector<256xf32> to vector<1x256xf32>
    %10 = vector.broadcast %9 : vector<1x256xf32> to vector<10x256xf32>
    %11 = arith.cmpf oeq, %4, %10 : vector<10x256xf32>
    %c10_i32 = arith.constant 10 : i32
    %12 = vector.broadcast %c10_i32 : i32 to vector<10x256xi32>
    %13 = arith.select %11, %7, %12 : vector<10x256xi1>, vector<10x256xi32>
    %cst_6 = arith.constant dense<2147483647> : vector<256xi32>
    %14 = vector.multi_reduction <minsi>, %13, %cst_6 [0] : vector<10x256xi32> to vector<256xi32>
    %15 = vector.shape_cast %14 : vector<256xi32> to vector<1x256xi32>
    %c1_i32 = arith.constant 1 : i32
    %16 = vector.broadcast %c1_i32 : i32 to vector<1x256xi32>
    %17 = arith.cmpi sge, %15, %16 : vector<1x256xi32>
    %18 = vector.broadcast %15 : vector<1x256xi32> to vector<10x256xi32>
    %19 = arith.cmpi eq, %7, %18 : vector<10x256xi32>
    %20 = vector.broadcast %17 : vector<1x256xi1> to vector<10x256xi1>
    %21 = arith.andi %19, %20 : vector<10x256xi1>
    %c0_7 = arith.constant 0 : index
    %c0_8 = arith.constant 0 : index
    %22 = vector.load %arg7[%c0_7, %c0_8] : memref<10x256xf32, #tpu.memory_space<vmem>>, vector<10x256xf32>
    %cst_9 = arith.constant 0.000000e+00 : f32
    %23 = vector.broadcast %cst_9 : f32 to vector<10x256xf32>
    %24 = arith.select %21, %6, %23 : vector<10x256xi1>, vector<10x256xf32>
    %25 = arith.addf %22, %24 : vector<10x256xf32>
    %c0_10 = arith.constant 0 : index
    %c0_11 = arith.constant 0 : index
    %26 = vector.load %arg7[%c0_10, %c0_11] : memref<10x256xf32, #tpu.memory_space<vmem>>, vector<10x256xf32>
    tpu.vector_store %arg7[%c0_10, %c0_11], %25 {strides = array<i32>} : memref<10x256xf32, #tpu.memory_space<vmem>>, vector<10x256xf32>,
    %c0_12 = arith.constant 0 : index
    %c0_13 = arith.constant 0 : index
    %27 = vector.load %arg8[%c0_12, %c0_13] : memref<10x256xf32, #tpu.memory_space<vmem>>, vector<10x256xf32>
    %28 = arith.addf %27, %6 : vector<10x256xf32>
    %c0_14 = arith.constant 0 : index
    %c0_15 = arith.constant 0 : index
    %29 = vector.load %arg8[%c0_14, %c0_15] : memref<10x256xf32, #tpu.memory_space<vmem>>, vector<10x256xf32>
    tpu.vector_store %arg8[%c0_14, %c0_15], %28 {strides = array<i32>} : memref<10x256xf32, #tpu.memory_space<vmem>>, vector<10x256xf32>,
    %c0_16 = arith.constant 0 : index
    %c0_17 = arith.constant 0 : index
    %30 = vector.load %arg9[%c0_16, %c0_17] : memref<1x256xf32, #tpu.memory_space<vmem>>, vector<1x256xf32>
    %31 = arith.extui %17 : vector<1x256xi1> to vector<1x256xi32>
    %32 = arith.sitofp %31 : vector<1x256xi32> to vector<1x256xf32>
    %33 = arith.addf %30, %32 : vector<1x256xf32>
    %c0_18 = arith.constant 0 : index
    %c0_19 = arith.constant 0 : index
    %34 = vector.load %arg9[%c0_18, %c0_19] : memref<1x256xf32, #tpu.memory_space<vmem>>, vector<1x256xf32>
    tpu.vector_store %arg9[%c0_18, %c0_19], %33 {strides = array<i32>} : memref<1x256xf32, #tpu.memory_space<vmem>>, vector<1x256xf32>,
    %c0_i32_20 = arith.constant 0 : i32
    %35 = arith.cmpi eq, %arg2, %c0_i32_20 : i32
    %36 = arith.extui %35 : i1 to i32
    %c0_i32_21 = arith.constant 0 : i32
    %37 = arith.cmpi ne, %36, %c0_i32_21 : i32
    scf.if %37 {
      %c0_22 = arith.constant 0 : index
      %c0_23 = arith.constant 0 : index
      %38 = vector.load %arg8[%c0_22, %c0_23] : memref<10x256xf32, #tpu.memory_space<vmem>>, vector<10x256xf32>
      %c0_24 = arith.constant 0 : index
      %c0_25 = arith.constant 0 : index
      %39 = vector.load %arg7[%c0_24, %c0_25] : memref<10x256xf32, #tpu.memory_space<vmem>>, vector<10x256xf32>
      %40 = vector.shape_cast %39 : vector<10x256xf32> to vector<1x10x256xf32>
      %cst_26 = arith.constant dense<0.000000e+00> : vector<1xf32>
      %41 = vector.multi_reduction <add>, %40, %cst_26 [1, 2] : vector<1x10x256xf32> to vector<1xf32>
      %42 = vector.shape_cast %41 : vector<1xf32> to vector<1x1x1xf32>
      %43 = vector.extract %42[0, 0, 0] : f32 from vector<1x1x1xf32>
      %44 = vector.shape_cast %38 : vector<10x256xf32> to vector<1x10x256xf32>
      %cst_27 = arith.constant dense<0.000000e+00> : vector<1xf32>
      %45 = vector.multi_reduction <add>, %44, %cst_27 [1, 2] : vector<1x10x256xf32> to vector<1xf32>
      %46 = vector.shape_cast %45 : vector<1xf32> to vector<1x1x1xf32>
      %47 = vector.extract %46[0, 0, 0] : f32 from vector<1x1x1xf32>
      %48 = vector.extract_strided_slice %38 {offsets = [0, 0], sizes = [1, 256], strides = [1, 1]} : vector<10x256xf32> to vector<1x256xf32>
      %49 = vector.shape_cast %48 : vector<1x256xf32> to vector<1x1x256xf32>
      %cst_28 = arith.constant dense<0.000000e+00> : vector<1xf32>
      %50 = vector.multi_reduction <add>, %49, %cst_28 [1, 2] : vector<1x1x256xf32> to vector<1xf32>
      %51 = vector.shape_cast %50 : vector<1xf32> to vector<1x1x1xf32>
      %52 = vector.extract %51[0, 0, 0] : f32 from vector<1x1x1xf32>
      %53 = arith.subf %47, %52 : f32
      %c0_29 = arith.constant 0 : index
      %c0_30 = arith.constant 0 : index
      %54 = vector.load %arg9[%c0_29, %c0_30] : memref<1x256xf32, #tpu.memory_space<vmem>>, vector<1x256xf32>
      %55 = vector.shape_cast %54 : vector<1x256xf32> to vector<1x1x256xf32>
      %cst_31 = arith.constant dense<0.000000e+00> : vector<1xf32>
      %56 = vector.multi_reduction <add>, %55, %cst_31 [1, 2] : vector<1x1x256xf32> to vector<1xf32>
      %57 = vector.shape_cast %56 : vector<1xf32> to vector<1x1x1xf32>
      %58 = vector.extract %57[0, 0, 0] : f32 from vector<1x1x1xf32>
      %59 = arith.addf %53, %58 : f32
      %60 = vector.broadcast %43 : f32 to vector<1x1x1xf32>
      %c0_32 = arith.constant 0 : index
      %c0_33 = arith.constant 0 : index
      %c0_34 = arith.constant 0 : index
      %61 = vector.load %arg5[%c0_32, %c0_33, %c0_34] : memref<1x1x1xf32, #tpu.memory_space<vmem>>, vector<1x1x1xf32>
      tpu.vector_store %arg5[%c0_32, %c0_33, %c0_34], %60 {strides = array<i32>} : memref<1x1x1xf32, #tpu.memory_space<vmem>>, vector<1x1x1xf32>,
      %62 = vector.broadcast %59 : f32 to vector<1x1x1xf32>
      %c0_35 = arith.constant 0 : index
      %c0_36 = arith.constant 0 : index
      %c0_37 = arith.constant 0 : index
      %63 = vector.load %arg6[%c0_35, %c0_36, %c0_37] : memref<1x1x1xf32, #tpu.memory_space<vmem>>, vector<1x1x1xf32>
      tpu.vector_store %arg6[%c0_35, %c0_36, %c0_37], %62 {strides = array<i32>} : memref<1x1x1xf32, #tpu.memory_space<vmem>>, vector<1x1x1xf32>,
    } else {
    }
    return
  }
  func.func @transform_0(%arg0: i32, %arg1: i32, %arg2: i32) -> (i32, i32, i32) {
    %c1_i32 = arith.constant 1 : i32
    %0 = arith.muli %arg1, %c1_i32 : i32
    %1 = arith.addi %0, %arg2 : i32
    %c0_i32 = arith.constant 0 : i32
    %c0_i32_0 = arith.constant 0 : i32
    return %arg0, %c0_i32, %1 : i32, i32, i32
  }
  func.func @transform_1(%arg0: i32, %arg1: i32, %arg2: i32) -> (i32, i32, i32) {
    %c1_i32 = arith.constant 1 : i32
    %0 = arith.muli %arg1, %c1_i32 : i32
    %1 = arith.addi %0, %arg2 : i32
    %c0_i32 = arith.constant 0 : i32
    %c0_i32_0 = arith.constant 0 : i32
    return %arg0, %c0_i32, %1 : i32, i32, i32
  }
  func.func @transform_2(%arg0: i32, %arg1: i32, %arg2: i32) -> (i32, i32, i32) {
    %c0_i32 = arith.constant 0 : i32
    %c0_i32_0 = arith.constant 0 : i32
    return %arg0, %arg1, %c0_i32 : i32, i32, i32
  }
  func.func @transform_3(%arg0: i32, %arg1: i32, %arg2: i32) -> (i32, i32, i32) {
    %c0_i32 = arith.constant 0 : i32
    %c0_i32_0 = arith.constant 0 : i32
    return %arg0, %arg1, %c0_i32 : i32, i32, i32
  }
}

</mosaic_0001>

<bundles_post_ra>
// kernel: tpu_custom_call.1
= control target key start
LH: loop header
LB: loop body
LE: loop exit
PB: predicated region body
PF: predicated region fallthrough
CT: control target
= control target key end

     0   :  { %s728_s12 = smov 0   ;;  %s730_s13 = smov 0   ;;  %s839_s0 = inlined_call_operand.vmem [shape: f32[2,10,256], index: 0, kind: input, shape index: {}]   ;;  %s840_s1 = inlined_call_operand.vmem [shape: f32[2,10,256], index: 1, kind: input, shape index: {}]   ;;  %s841_s2 = inlined_call_operand.vmem [shape: f32[2,1,1], index: 2, kind: output, shape index: {0}]   ;;  %s842_s3 = inlined_call_operand.vmem [shape: f32[2,1,1], index: 3, kind: output, shape index: {1}]  }
   0x1   :  { %s732_s14 = smov 0  }
   0x2 LB: > { %s33_s15 = sadd.s32 1, %s700_s13  ;;  %p637_p0 = scmp.ge.s32.totalorder %s704_s14, 1  ;;  %s704_s14 = sphi %s732_s14, %s14_s14   ;;  %s700_s13 = sphi %s730_s13, %s850_s13   ;;  %s696_s12 = sphi %s728_s12, %s849_s12  }
   0x3   : > { %p35_p1 = scmp.ge.s32.totalorder %s33_s15, 2  ;;  %p195_p2 = scmp.lt.s32.totalorder %s704_s14, 3 }
   0x5   : > { %s852_s15 = smov (%p35_p1, %s33_s15), 0  ;;  %p196_p3 = pnand %p637_p0, %p195_p2 }
   0x6   : > { %p243_p4 = scmp.lt.s32.totalorder (!%p196_p3), %s696_s12, 1  ;;  %v289_v0 = vlaneseq (!%p196_p3)  ;;  %v706_v1 = vmov (!%p196_p3), 0.0   ;;  %vm305_vm1 = vcmask (!%p196_p3), 1041408   ;;  %vm462_vm2 = vcmask (!%p196_p3), 1040384  }
   0x7   : > { %199 = sbr.rel (%p196_p3) target bundleno = 285 (0x11d), region = 28  ;;  %283 = vst [vmem:[#allocation2 + $0x10] sm:$0x3] (!%p196_p3), %v706_v1  ;;  %284 = vst [vmem:[#allocation2 + $0x18] sm:$0x3] (!%p196_p3), %v706_v1 }
   0x8   : > { %287 = vst [vmem:[#allocation3 + $0x10] sm:$0x3] (!%p196_p3), %v706_v1  ;;  %288 = vst [vmem:[#allocation3 + $0x18] sm:$0x3] (!%p196_p3), %v706_v1  ;;  %vm752_vm0 = vcmp.lt.s32.totalorder (!%p196_p3), %v289_v0, 256  ;;  %v782_v27 = vshrl.u32 (!%p196_p3), %v289_v0, 7 }
   0x9   : > { %293 = vst.msk [vmem:[#allocation4] sm:$0x3] (!%p196_p3), %vm752_vm0, %v706_v1  ;;  %v707_v47 = vmov (!%p196_p3), 1966171168  }
   0xa   : > { %v304_v32 = vadd.s32 (!%p196_p3), 8, %v782_v27  ;;  %v403_v48 = vunpack.c.l.s4 (!%p196_p3), %v707_v47 }
   0xc   : > { %v404_v53 = vunpack.c.0.s8 (!%p196_p3), %v403_v48 }
   0xe   : > { %s854_s12 = smov (!%p243_p4, %s696_s12), 1  ;;  %v407_v58 = vsub.s32 %v404_v53, %v782_v27  ;;  %v370_v63 = vld [vmem:[#allocation2 + $0x10] sm:$0x3] }
   0xf   : > { %s646_s16 = sshll.u32 %s854_s12, 5  ;;  %v386_v18 = vld [vmem:[#allocation3 + $0x10] sm:$0x3]  ;;  %v387_v19 = vld [vmem:[#allocation3 + $0x18] sm:$0x3]  ;;  %s270_s25 = scalar_lea.vmem %s841_s2, %s854_s12 }
  0x10   : > { %s250_s19 = scalar_lea.vmem %s839_s0, %s646_s16  ;;  %s262_s22 = scalar_lea.vmem %s840_s1, %s646_s16 }
  0x11   : > { %v766_v3 = vld [vmem:[%s250_s19] sm:$0xff]  ;;  %v768_v4 = vld [vmem:[%s250_s19 + $0x8] sm:$0xff]  ;;  %v296_v7 = vld [vmem:[%s262_s22 + $0x10] sm:$0x3]  ;;  %s276_s6 = scalar_lea.vmem %s842_s3, %s854_s12 }
  0x12   : > { %v294_v5 = vld [vmem:[%s262_s22] sm:$0xff]  ;;  %v295_v6 = vld [vmem:[%s262_s22 + $0x8] sm:$0xff]  ;;  %v297_v8 = vld [vmem:[%s262_s22 + $0x18] sm:$0x3]  ;;  %v306_v9 = vsel %vm305_vm1, %v296_v7, -inf  ;;  %v463_v11 = vsel %vm462_vm2, %v766_v3, 0.0 }
  0x13   : > { %v314_v10 = vsel %vm305_vm1, %v297_v8, -inf  ;;  %v464_v12 = vsel %vm462_vm2, %v768_v4, 0.0  ;;  %v776_v13 = vld [vmem:[%s250_s19 + $0x10] sm:$0x3]  ;;  %v307_v14 = vmax.f32 %v294_v5, %v306_v9  ;;  %v778_v16 = vld [vmem:[%s250_s19 + $0x18] sm:$0x3] }
  0x14   : > { %v465_v15 = vadd.f32 %v464_v12, %v463_v11  ;;  %v315_v17 = vmax.f32 %v295_v6, %v314_v10  ;;  %v390_v21 = vadd.f32 %v386_v18, %v776_v13  ;;  %v391_v22 = vadd.f32 %v387_v19, %v778_v16 }
  0x15   : > { %v308_v20 = vrot.slane %v307_v14, 4  ;;  %v448_v19 = vadd.f32 %v768_v4, %v766_v3 }
  0x16   : > { %466 = vadd.xlane.f32.xlu1 %v465_v15  ;;  %v316_v23 = vrot.slane %v315_v17, 4  ;;  %394 = vst [vmem:[#allocation3 + $0x10] sm:$0x3] %v390_v21  ;;  %395 = vst [vmem:[#allocation3 + $0x18] sm:$0x3] %v391_v22 }
  0x17   : > { %v309_v24 = vmax.f32 %v307_v14, %v308_v20  ;;  %v396_v15 = vld [vmem:[#allocation4] sm:$0x3] }
  0x18   : > { %v317_v25 = vmax.f32 %v315_v17, %v316_v23 }
  0x19   : > { %v310_v26 = vrot.slane %v309_v24, 2 }
  0x1a   : > { %v318_v28 = vrot.slane %v317_v25, 2 }
  0x1b   : > { %v311_v29 = vmax.f32 %v309_v24, %v310_v26  ;;  %v480_v24 = vsub.s32 0, %v782_v27 }
  0x1c   : > { %v319_v30 = vmax.f32 %v317_v25, %v318_v28  ;;  %v484_v25 = vsub.s32 1, %v782_v27 }
  0x1d   : > { %v312_v31 = vrot.slane %v311_v29, 1  ;;  %v428_v18 = vld [vmem:[#allocation3 + $0x10] sm:$0x3] }
  0x1e   : > { %v320_v33 = vrot.slane %v319_v30, 1 }
  0x1f   : > { %v313_v34 = vmax.f32 %v311_v29, %v312_v31 }
  0x20   : > { %v321_v35 = vmax.f32 %v319_v30, %v320_v33 }
  0x21   : > { %vm322_vm3 = vcmp.eq.f32.partialorder %v294_v5, %v313_v34  ;;  %vm324_vm4 = vcmp.eq.f32.partialorder %v296_v7, %v313_v34 }
  0x22   : > { %vm323_vm5 = vcmp.eq.f32.partialorder %v295_v6, %v321_v35  ;;  %vm325_vm6 = vcmp.eq.f32.partialorder %v297_v8, %v321_v35  ;;  %v326_v36 = vsel %vm322_vm3, %v782_v27, 10  ;;  %v328_v37 = vsel %vm324_vm4, %v304_v32, 10  ;;  %v371_v6 = vld [vmem:[#allocation2 + $0x18] sm:$0x3] }
  0x23   : > { %v327_v38 = vsel %vm323_vm5, %v782_v27, 10  ;;  %v329_v39 = vsel %vm325_vm6, %v304_v32, 10  ;;  %v330_v40 = vsel %vm305_vm1, %v328_v37, 2147483647 }
  0x24   : > { %vm331_vm7 = vcmp.lt.s32.totalorder %v326_v36, %v330_v40  ;;  %v342_v41 = vsel %vm305_vm1, %v329_v39, 2147483647 }
  0x25   : > { %v332_v42 = vsel %vm331_vm7, %v326_v36, %v330_v40  ;;  %vm343_vm8 = vcmp.lt.s32.totalorder %v327_v38, %v342_v41 }
  0x26   : > { %v333_v43 = vrot.slane %v332_v42, 4  ;;  %v344_v44 = vsel %vm343_vm8, %v327_v38, %v342_v41 }
  0x27   : > { %v345_v45 = vrot.slane %v344_v44, 4 }
  0x28   : > { %vm334_vm9 = vcmp.lt.s32.totalorder %v332_v42, %v333_v43 }
  0x29   : > { %v335_v46 = vsel %vm334_vm9, %v332_v42, %v333_v43  ;;  %vm346_vm10 = vcmp.lt.s32.totalorder %v344_v44, %v345_v45 }
  0x2a   : > { %v336_v49 = vrot.slane %v335_v46, 2  ;;  %v347_v50 = vsel %vm346_vm10, %v344_v44, %v345_v45 }
  0x2b   : > { %v348_v51 = vrot.slane %v347_v50, 2 }
  0x2c   : > { %vm337_vm11 = vcmp.lt.s32.totalorder %v335_v46, %v336_v49 }
  0x2d   : > { %v338_v52 = vsel %vm337_vm11, %v335_v46, %v336_v49  ;;  %vm349_vm12 = vcmp.lt.s32.totalorder %v347_v50, %v348_v51 }
  0x2e   : > { %v339_v54 = vrot.slane %v338_v52, 1  ;;  %v350_v55 = vsel %vm349_vm12, %v347_v50, %v348_v51 }
  0x2f   : > { %v351_v56 = vrot.slane %v350_v55, 1 }
  0x30   : > { %vm340_vm13 = vcmp.lt.s32.totalorder %v338_v52, %v339_v54 }
  0x31   : > { %v341_v57 = vsel %vm340_vm13, %v338_v52, %v339_v54  ;;  %vm352_vm14 = vcmp.lt.s32.totalorder %v350_v55, %v351_v56 }
  0x32   : > { %v353_v59 = vsel %vm352_vm14, %v350_v55, %v351_v56  ;;  %vm354_vm15 = vcmp.ge.s32.totalorder %v341_v57, 1  ;;  %vm356_vm3 = vcmp.eq.s32.totalorder %v782_v27, %v341_v57  ;;  %vm358_vm4 = vcmp.eq.s32.totalorder %v304_v32, %v341_v57 }
  0x33   : > { %vm355_vm5 = vcmp.ge.s32.totalorder %v353_v59, 1  ;;  %vm357_vm6 = vcmp.eq.s32.totalorder %v782_v27, %v353_v59  ;;  %vm359_vm7 = vcmp.eq.s32.totalorder %v304_v32, %v353_v59  ;;  %vm792_vm8 = vmand %vm356_vm3, %vm354_vm15  ;;  %v642_v61 = vsel %vm354_vm15, 1.0, %v706_v1 }
  0x34   : > { %vm797_vm9 = vmand %vm357_vm6, %vm355_vm5  ;;  %v372_v0 = vsel %vm792_vm8, %v766_v3, 0.0  ;;  %v643_v5 = vsel %vm355_vm5, 1.0, %v706_v1 }
  0x35   : > { %vm366_vm10 = vmand %vm358_vm4, %vm354_vm15  ;;  %v373_v7 = vsel %vm797_vm9, %v768_v4, 0.0  ;;  %v401_v8 = vcombine.low %v642_v61, %v643_v5 }
  0x36   : > { %vm367_vm11 = vmand %vm359_vm7, %vm355_vm5  ;;  %v374_v9 = vsel %vm366_vm10, %v776_v13, 0.0  ;;  %v434_v20 = vadd.f32 %v373_v7, %v372_v0  ;;  %v449_v13 = vsel %vm305_vm1, %v428_v18, 0.0 }
  0x37   : > { %v375_v10 = vsel %vm367_vm11, %v778_v16, 0.0  ;;  %v378_v11 = vadd.f32 %v374_v9, %v370_v63  ;;  %v408_v12 = vrot.slane %v401_v8, %v407_v58  ;;  %v429_v16 = vld [vmem:[#allocation3 + $0x18] sm:$0x3]  ;;  %v450_v2 = vadd.f32 %v449_v13, %v448_v19 }
  0x38   : > { %v379_v14 = vadd.f32 %v375_v10, %v371_v6  ;;  %v451_v29 = vsel %vm305_vm1, %v429_v16, 0.0 }
  0x39   : > { %382 = vst [vmem:[#allocation2 + $0x10] sm:$0x3] %v378_v11  ;;  %v415_v17 = vrot.slane %v408_v12, %v407_v58  ;;  %v452_v32 = vadd.f32 %v451_v29, %v450_v2 }
  0x3a   : > { %383 = vst [vmem:[#allocation2 + $0x18] sm:$0x3] %v379_v14 }
  0x3b   : > { %v417_v1 = vadd.f32 %v415_v17, %v396_v15 }
  0x3d   : > { %422 = vst.msk [vmem:[#allocation4] sm:$0x3] %vm752_vm0, %v417_v1  ;;  %vm502_vm0 = vcmask 0  }
  0x40   : > { %v432_v21 = vld [vmem:[#allocation2 + $0x10] sm:$0x3] }
  0x41   : > { %v433_v22 = vld [vmem:[#allocation2 + $0x18] sm:$0x3]  ;;  %v435_v23 = vsel %vm305_vm1, %v432_v21, 0.0 }
  0x42   : > { %v436_v26 = vadd.f32 %v435_v23, %v434_v20  ;;  %v437_v28 = vsel %vm305_vm1, %v433_v22, 0.0 }
  0x44   : > { %v438_v30 = vadd.f32 %v437_v28, %v436_v26  ;;  %v476_v3 = vld [vmem:[#allocation4] sm:$0x3] }
  0x45   : > { %v481_v4 = vrot.slane %v476_v3, %v480_v24  ;;  %v485_v31 = vrot.slane %v476_v3, %v484_v25 }
  0x46   : > { %439 = vadd.xlane.f32.xlu0 %v438_v30 }
  0x47   : > { %v488_v33 = vsel %vm462_vm2, %v481_v4, 0.0  ;;  %v489_v34 = vsel %vm462_vm2, %v485_v31, 0.0 }
  0x48   : > { %v490_v35 = vadd.f32 %v489_v34, %v488_v33 }
  0x4a   : > { %491 = vadd.xlane.f32.xlu1 %v490_v35  ;;  %453 = vadd.xlane.f32.xlu0 %v452_v32 }
  0xa3   : > { %v467_v27 = vpop.xlane.xlu1 %466 }
  0xa4   : > { %v468_v36 = vrot.slane %v467_v27, 4 }
  0xa6   : > { %v469_v37 = vadd.f32 %v468_v36, %v467_v27 }
  0xa8   : > { %v470_v41 = vrot.slane %v469_v37, 2 }
  0xaa   : > { %v471_v50 = vadd.f32 %v470_v41, %v469_v37 }
  0xac   : > { %v472_v57 = vrot.slane %v471_v50, 1 }
  0xae   : > { %v473_v62 = vadd.f32 %v472_v57, %v471_v50 }
  0xd3   : > { %v440_v38 = vpop.xlane.xlu0 %439 }
  0xd4   : > { %v441_v39 = vrot.slane %v440_v38, 4 }
  0xd6   : > { %v442_v40 = vadd.f32 %v441_v39, %v440_v38 }
  0xd7   : > { %v492_v42 = vpop.xlane.xlu1 %491  ;;  %v454_v43 = vpop.xlane.xlu0 %453 }
  0xd8   : > { %v443_v44 = vrot.slane %v442_v40, 2  ;;  %v493_v45 = vrot.slane %v492_v42, 4  ;;  %v455_v46 = vrot.slane %v454_v43, 4 }
  0xda   : > { %v494_v47 = vadd.f32 %v493_v45, %v492_v42  ;;  %v456_v48 = vadd.f32 %v455_v46, %v454_v43  ;;  %v444_v49 = vadd.f32 %v443_v44, %v442_v40 }
  0xdc   : > { %v495_v51 = vrot.slane %v494_v47, 2  ;;  %v457_v52 = vrot.slane %v456_v48, 2  ;;  %v445_v53 = vrot.slane %v444_v49, 1 }
  0xde   : > { %v496_v54 = vadd.f32 %v495_v51, %v494_v47  ;;  %v458_v55 = vadd.f32 %v457_v52, %v456_v48  ;;  %v446_v56 = vadd.f32 %v445_v53, %v444_v49 }
  0xe0   : > { %648 = vpush %v446_v56  ;;  %v459_v58 = vrot.slane %v458_v55, 1  ;;  %v497_v59 = vrot.slane %v496_v54, 1 }
  0xe2   : > { %v460_v60 = vadd.f32 %v459_v58, %v458_v55  ;;  %v498_v61 = vadd.f32 %v497_v59, %v496_v54 }
  0xe4   : > { %650 = vpush %v460_v60 }
  0xe5   : > { %652 = vpush %v473_v62 }
  0xe6   : > { %654 = vpush %v498_v61 }
 0x111   : > { %s649_s26 = spop %648 }
 0x112   : > { %v501_v63 = vstv %s649_s26 }
 0x113   : > { %503 = vst.msk [vmem:[%s270_s25] sm:$0x1] %vm502_vm0, %v501_v63 }
 0x115   : > { %s651_s27 = spop %650 }
 0x116   : > { %s653_s28 = spop %652 }
 0x117   : > { %s475_s29 = ssub.f32 %s651_s27, %s653_s28  ;;  %s655_s30 = spop %654 }
 0x119   : > { %s500_s7 = sadd.f32 %s655_s30, %s475_s29 }
 0x11b   : > { %v504_v0 = vstv %s500_s7 }
 0x11c   : > { %505 = vst.msk [vmem:[%s276_s6] sm:$0x1] %vm502_vm0, %v504_v0 }
 0x11d PF: > { %s14_s14 = sadd.s32 1, %s704_s14   ;;  %s849_s12 = smov %s700_s13 }
 0x11e   : > { %p11_p5 = scmp.ge.s32.totalorder %s14_s14, 4   ;;  %s850_s13 = smov %s852_s15 }
 0x120   :  { %13 = sbr.rel (!%p11_p5) target bundleno = 2 (0x2), region = 81 }

</bundles_post_ra>
